<compile_context>
chip_gen: v7x
topology: tpu7x:2x2x1
jax: 0.10.0
libtpu: 0.0.40
codegen_flags: <defaults>
</compile_context>

<pallas_src>
import jax
import jax.numpy as jnp
from jax.experimental import pallas as pl
from jax.experimental.pallas import tpu as pltpu

_LANE = 128                   # vreg lane width
_MAX_LANE_WIDTH = 32768       # widest lane-dense row considered (128 KiB/row f32)
_PER_BUFFER_TARGET = 8 << 20  # ~8 MiB per live buffer (capped by VMEM below)


def _bayes_identity_kernel(x_ref, y_ref):
    # Base-class forward hot path: pure pass-through on one lane-dense tile.
    y_ref[...] = x_ref[...]


def _vmem_capacity_bytes():
    # Generation-aware VMEM budget (v5e/v6e: 128 MiB, v7x: 64 MiB per TC).
    try:
        return int(pltpu.get_tpu_info().vmem_capacity_bytes)
    except Exception:
        return 64 << 20  # conservative fallback (v7x-sized)


def _sublane_quantum(dtype):
    # Packed-tile sublane quantum: f32 -> 8, bf16 -> 16, int8/fp8 -> 32.
    itemsize = jnp.dtype(dtype).itemsize
    return 8 * max(1, 4 // max(1, itemsize))


def _widest_lane_dim(total):
    # Largest multiple of 128 that divides `total` and is <= _MAX_LANE_WIDTH.
    if total % _LANE:
        return 0
    base = total // _LANE
    for d in range(min(base, _MAX_LANE_WIDTH // _LANE), 0, -1):
        if base % d == 0:
            return _LANE * d
    return _LANE


@jax.jit
def _identity_forward(x):
    total = x.size
    itemsize = jnp.dtype(x.dtype).itemsize
    quantum = _sublane_quantum(x.dtype)

    vmem = _vmem_capacity_bytes()
    # Input + output, each double-buffered -> ~4 live buffers; leave headroom.
    per_buf = max(1 << 20, min(_PER_BUFFER_TARGET, vmem // 8))
    vmem_limit = min(vmem * 3 // 4, 96 << 20)

    width = _widest_lane_dim(total)
    flat = x.reshape(-1)  # row-major reshape: no HBM copy

    if width == 0 or total // width < quantum:
        # Tiny or lane-unaligned input: one full-array block (block == full dims,
        # so no (8,128) divisibility requirement and still no padding copies).
        # TODO(synk): very large lane-unaligned inputs would need a masked-tail path.
        if width == 0:
            x2d = flat.reshape(1, total)
        else:
            x2d = flat.reshape(total // width, width)
        rows, w = x2d.shape
        block_rows = rows
        grid = (1,)
    else:
        w = width
        rows = total // w
        row_bytes = w * itemsize
        block_rows = min(rows, (per_buf // row_bytes) // quantum * quantum)
        block_rows = max(quantum, block_rows)
        # Keep >= 2 grid steps when possible so both v7x TensorCores get work.
        if block_rows >= rows and rows >= 2 * quantum:
            block_rows = (-(-rows // 2) + quantum - 1) // quantum * quantum
        x2d = flat.reshape(rows, w)
        grid = (-(-rows // block_rows),)  # cdiv; ragged last block is masked by Pallas

    spec = pl.BlockSpec((block_rows, w), lambda i: (i, 0))

    y2d = pl.pallas_call(
        _bayes_identity_kernel,
        out_shape=jax.ShapeDtypeStruct(x2d.shape, x2d.dtype),
        grid=grid,
        in_specs=[spec],
        out_specs=spec,
        compiler_params=pltpu.CompilerParams(
            dimension_semantics=("parallel",),  # shard the copy across TCs (v7x)
            vmem_limit_bytes=vmem_limit,
        ),
        cost_estimate=pl.CostEstimate(
            flops=0,
            transcendentals=0,
            bytes_accessed=2 * total * itemsize,
        ),
    )(x2d)

    return y2d.reshape(x.shape)


def bayes_layer_forward(x):
    """BayesLayer base-class semantics: (identity(x), variational_loss, prior_loss)."""
    y = _identity_forward(x)
    # get_losses() == (0, 0): plain Python ints, no device scalars / host syncs.
    variational_loss = 0
    prior_loss = 0
    return y, variational_loss, prior_loss


if __name__ == "__main__":
    key = jax.random.PRNGKey(0)
    # Small NCHW input consistent with a conv/linear Bayes layer subclass.
    x = jax.random.normal(key, (2, 4, 16, 16), dtype=jnp.float32)

    y, vloss, ploss = bayes_layer_forward(x)
    jax.block_until_ready(y)

    # Semantics checks: identity pass-through, zero losses.
    assert y.shape == x.shape and y.dtype == x.dtype
    assert bool(jnp.all(y == x))
    assert float(vloss) == 0.0 and float(ploss) == 0.0

    print("KERNEL_OK")
</pallas_src>

<mosaic_0001>
module attributes {stable_mosaic.version = 11 : i64} {
  func.func @_bayes_identity_kernel(%arg0: i32, %arg1: memref<1x2048xf32, #tpu.memory_space<vmem>>, %arg2: memref<1x2048xf32, #tpu.memory_space<vmem>>) attributes {dimension_semantics = [#tpu.dimension_semantics<parallel>], iteration_bounds = array<i64: 1>, scalar_prefetch = 0 : i64, scratch_operands = 0 : i64, tpu.core_type = #tpu.core_type<tc>, window_params = [{transform_indices = @transform_0, window_bounds = array<i64: 1, 2048>}, {transform_indices = @transform_1, window_bounds = array<i64: 1, 2048>}]} {
    %c0 = arith.constant 0 : index
    %c0_0 = arith.constant 0 : index
    %0 = vector.load %arg1[%c0, %c0_0] : memref<1x2048xf32, #tpu.memory_space<vmem>>, vector<1x2048xf32>
    %c0_1 = arith.constant 0 : index
    %c0_2 = arith.constant 0 : index
    %1 = vector.load %arg2[%c0_1, %c0_2] : memref<1x2048xf32, #tpu.memory_space<vmem>>, vector<1x2048xf32>
    tpu.vector_store %arg2[%c0_1, %c0_2], %0 {strides = array<i32>} : memref<1x2048xf32, #tpu.memory_space<vmem>>, vector<1x2048xf32>,
    return
  }
  func.func @transform_0(%arg0: i32) -> (i32, i32) {
    %c0_i32 = arith.constant 0 : i32
    %c0_i32_0 = arith.constant 0 : i32
    return %arg0, %c0_i32 : i32, i32
  }
  func.func @transform_1(%arg0: i32) -> (i32, i32) {
    %c0_i32 = arith.constant 0 : i32
    %c0_i32_0 = arith.constant 0 : i32
    return %arg0, %c0_i32 : i32, i32
  }
}

</mosaic_0001>

<bundles_post_ra>
// kernel: _identity_forward.1
= control target key start
LH: loop header
LB: loop body
LE: loop exit
PB: predicated region body
PF: predicated region fallthrough
CT: control target
= control target key end

     0   :  { %s38_s0 = inlined_call_operand.vmem [shape: f32[1,2048], index: 0, kind: input, shape index: {}]   ;;  %s39_s1 = inlined_call_operand.vmem [shape: f32[1,2048], index: 1, kind: output, shape index: {}]  }
   0x1   :  { %v8_v0 = vld [vmem:[%s38_s0] sm:$0xff]  ;;  %v9_v1 = vld [vmem:[%s38_s0 + $0x8] sm:$0xff] }
   0x2   :  { %10 = vst [vmem:[%s39_s1] sm:$0xff] %v8_v0  ;;  %11 = vst [vmem:[%s39_s1 + $0x8] sm:$0xff] %v9_v1 }

</bundles_post_ra>
